<compile_context>
chip_gen: v6e
topology: v6e:2x2x1
jax: 0.10.0
libtpu: 0.0.40
codegen_flags: <defaults>
</compile_context>

<pallas_src>
import jax
import jax.numpy as jnp
from jax import lax
from jax.experimental import pallas as pl
from jax.experimental.pallas import tpu as pltpu


def _num_tensorcores():
    """Best-effort TensorCore-per-chip count (2 on v7x-class parts, else 1)."""
    try:
        dev = jax.devices()[0]
        n = getattr(dev, "num_cores", None)
        if isinstance(n, int) and n > 0:
            return n
        kind = (getattr(dev, "device_kind", "") or "").lower()
        return 2 if "v7" in kind else 1
    except Exception:
        return 1


def _pick_tiles(n_bc, D, hw, itemsize, num_tc):
    """Choose (t_bc, t_d) block sizes for x viewed as (n_bc, D, hw)."""
    # Sublane alignment for the second-to-last block dim (t_d).
    sub = {4: 8, 2: 16, 1: 32}.get(itemsize, 8)
    row_bytes = hw * itemsize
    slice_bytes = D * row_bytes

    # Per-block byte target: big enough for DMA efficiency, small enough that
    # double-buffered in+out (4x block) fits comfortably in scoped VMEM on
    # every generation (v7x physical VMEM is only 64 MiB).
    block_budget = 8 << 20

    if slice_bytes <= block_budget:
        t_d = D                                   # whole depth per block
    else:
        # Largest sublane-aligned depth tile that fits the budget.
        t_d = max(sub, (block_budget // row_bytes) // sub * sub)
        if t_d >= D:
            t_d = D

    per_slice = t_d * row_bytes
    t_bc = max(1, block_budget // per_slice)
    t_bc = min(t_bc, n_bc)

    # 2-TC parts (v7x): make the bc step count a multiple of the TC count so
    # both cores stream HBM; single-TC parts keep the largest block.
    if num_tc > 1 and n_bc >= num_tc:
        steps = pl.cdiv(n_bc, t_bc)
        steps = num_tc * pl.cdiv(steps, num_tc)
        t_bc = pl.cdiv(n_bc, steps)

    return t_bc, t_d


def _make_kernel(center, thresh, t_d, hw, out_dtype):
    center = float(center)
    thresh = float(thresh)

    def kernel(x_ref, sp_ref, o_ref):
        # x_ref / o_ref: (t_bc, t_d, hw); sp_ref: (1, hw) spatial sq-distance.
        d0 = pl.program_id(1) * t_d
        di = lax.broadcasted_iota(jnp.int32, (t_d, hw), 0) + d0
        dsq = (center - di.astype(jnp.float32)) ** 2      # depth contribution
        dist = dsq + sp_ref[...]                           # (t_d, hw)
        mask = (dist <= thresh).astype(out_dtype)
        o_ref[...] = x_ref[...] * mask[None]               # broadcast over bc

    return kernel


def spherical_mask(volume, radius_fraction=1.0, donate=False):
    """Applies the spherical mask.  volume: (B, C, D, H, W) with D == H == W."""
    B, C, D, H, W = volume.shape
    assert D == H == W, "Depth, height, width must be equal."
    n_bc = B * C
    hw = H * W

    # Flattened spatial axis sits on the 128-lane dimension; full-extent last
    # block dim keeps stores lane-dense (hw is a multiple of 128 for even H,W;
    # for odd H,W the full-extent block is still legal and correct).
    x = volume.reshape(n_bc, D, hw)

    center = (D - 1) / 2.0          # mask_center == radius in the module
    thresh = (radius_fraction * center) ** 2

    # Tiny (1, hw) spatial squared-distance table; constant block index keeps
    # it VMEM-resident for the whole grid.  The depth term is an in-kernel iota.
    jj = jnp.arange(H, dtype=jnp.float32)[:, None]
    kk = jnp.arange(W, dtype=jnp.float32)[None, :]
    sp_sq = ((center - jj) ** 2 + (center - kk) ** 2).reshape(1, hw)

    itemsize = jnp.dtype(volume.dtype).itemsize
    num_tc = _num_tensorcores()
    t_bc, t_d = _pick_tiles(n_bc, D, hw, itemsize, num_tc)
    grid = (pl.cdiv(n_bc, t_bc), pl.cdiv(D, t_d))

    kernel = _make_kernel(center, thresh, t_d, hw, volume.dtype)

    out = pl.pallas_call(
        kernel,
        out_shape=jax.ShapeDtypeStruct((n_bc, D, hw), volume.dtype),
        grid=grid,
        in_specs=[
            pl.BlockSpec((t_bc, t_d, hw), lambda i, d: (i, d, 0)),
            pl.BlockSpec((1, hw), lambda i, d: (0, 0)),
        ],
        out_specs=pl.BlockSpec((t_bc, t_d, hw), lambda i, d: (i, d, 0)),
        compiler_params=pltpu.CompilerParams(
            dimension_semantics=("parallel", "parallel"),
            vmem_limit_bytes=48 << 20,
        ),
        # Optionally write in place (only when the caller no longer needs the
        # input) to avoid a second full-size HBM allocation.
        input_output_aliases={0: 0} if donate else {},
    )(x, sp_sq)
    return out.reshape(B, C, D, H, W)


def _reference(volume, radius_fraction=1.0):
    """Pure-JAX reference replicating the PyTorch buffer construction."""
    B, C, D, H, W = volume.shape
    center = (D - 1) / 2.0
    thresh = (radius_fraction * center) ** 2
    ii, jj, kk = jnp.meshgrid(
        jnp.arange(D, dtype=jnp.float32),
        jnp.arange(H, dtype=jnp.float32),
        jnp.arange(W, dtype=jnp.float32),
        indexing="ij",
    )
    sq = (center - ii) ** 2 + (center - jj) ** 2 + (center - kk) ** 2
    mask = jnp.where(sq > thresh, 0.0, 1.0).astype(volume.dtype)
    return volume * mask[None, None]


if __name__ == "__main__":
    key = jax.random.PRNGKey(0)
    B, C, D, H, W = 2, 4, 16, 16, 16
    volume = jax.random.normal(key, (B, C, D, H, W), dtype=jnp.float32)

    out = spherical_mask(volume, radius_fraction=0.9)
    out = jax.block_until_ready(out)

    ref = _reference(volume, radius_fraction=0.9)
    assert out.shape == (B, C, D, H, W)
    assert jnp.allclose(out, ref), "mismatch vs reference"

    print("KERNEL_OK")
</pallas_src>

<mosaic_0001>
module attributes {stable_mosaic.version = 11 : i64} {
  func.func @kernel(%arg0: i32, %arg1: i32, %arg2: memref<8x16x256xf32, #tpu.memory_space<vmem>>, %arg3: memref<1x256xf32, #tpu.memory_space<vmem>>, %arg4: memref<8x16x256xf32, #tpu.memory_space<vmem>>) attributes {dimension_semantics = [#tpu.dimension_semantics<parallel>, #tpu.dimension_semantics<parallel>], iteration_bounds = array<i64: 1, 1>, scalar_prefetch = 0 : i64, scratch_operands = 0 : i64, tpu.core_type = #tpu.core_type<tc>, window_params = [{transform_indices = @transform_0, window_bounds = array<i64: 8, 16, 256>}, {pipeline_mode = #tpu.pipeline_mode<synchronous>, transform_indices = @transform_1, window_bounds = array<i64: 1, 256>}, {transform_indices = @transform_2, window_bounds = array<i64: 8, 16, 256>}]} {
    %c16_i32 = arith.constant 16 : i32
    %0 = arith.muli %arg1, %c16_i32 : i32
    %1 = tpu.iota {dimensions = array<i32: 0>} : vector<16x256xi32>
    %2 = vector.broadcast %0 : i32 to vector<16x256xi32>
    %3 = arith.addi %1, %2 : vector<16x256xi32>
    %4 = arith.sitofp %3 : vector<16x256xi32> to vector<16x256xf32>
    %cst = arith.constant 7.500000e+00 : f32
    %5 = vector.broadcast %cst : f32 to vector<16x256xf32>
    %6 = arith.subf %5, %4 : vector<16x256xf32>
    %7 = arith.mulf %6, %6 : vector<16x256xf32>
    %c0 = arith.constant 0 : index
    %c0_0 = arith.constant 0 : index
    %8 = vector.load %arg3[%c0, %c0_0] : memref<1x256xf32, #tpu.memory_space<vmem>>, vector<1x256xf32>
    %9 = vector.broadcast %8 : vector<1x256xf32> to vector<16x256xf32>
    %10 = arith.addf %7, %9 : vector<16x256xf32>
    %cst_1 = arith.constant 4.556250e+01 : f32
    %11 = vector.broadcast %cst_1 : f32 to vector<16x256xf32>
    %12 = arith.cmpf ole, %10, %11 : vector<16x256xf32>
    %13 = arith.extui %12 : vector<16x256xi1> to vector<16x256xi32>
    %14 = arith.sitofp %13 : vector<16x256xi32> to vector<16x256xf32>
    %c0_2 = arith.constant 0 : index
    %c0_3 = arith.constant 0 : index
    %c0_4 = arith.constant 0 : index
    %15 = vector.load %arg2[%c0_2, %c0_3, %c0_4] : memref<8x16x256xf32, #tpu.memory_space<vmem>>, vector<8x16x256xf32>
    %16 = vector.shape_cast %14 : vector<16x256xf32> to vector<1x16x256xf32>
    %17 = vector.broadcast %16 : vector<1x16x256xf32> to vector<8x16x256xf32>
    %18 = arith.mulf %15, %17 : vector<8x16x256xf32>
    %c0_5 = arith.constant 0 : index
    %c0_6 = arith.constant 0 : index
    %c0_7 = arith.constant 0 : index
    %19 = vector.load %arg4[%c0_5, %c0_6, %c0_7] : memref<8x16x256xf32, #tpu.memory_space<vmem>>, vector<8x16x256xf32>
    tpu.vector_store %arg4[%c0_5, %c0_6, %c0_7], %18 {strides = array<i32>} : memref<8x16x256xf32, #tpu.memory_space<vmem>>, vector<8x16x256xf32>,
    return
  }
  func.func @transform_0(%arg0: i32, %arg1: i32) -> (i32, i32, i32) {
    %c0_i32 = arith.constant 0 : i32
    %c0_i32_0 = arith.constant 0 : i32
    return %arg0, %arg1, %c0_i32 : i32, i32, i32
  }
  func.func @transform_1(%arg0: i32, %arg1: i32) -> (i32, i32) {
    %c0_i32 = arith.constant 0 : i32
    %c0_i32_0 = arith.constant 0 : i32
    %c0_i32_1 = arith.constant 0 : i32
    return %c0_i32, %c0_i32_0 : i32, i32
  }
  func.func @transform_2(%arg0: i32, %arg1: i32) -> (i32, i32, i32) {
    %c0_i32 = arith.constant 0 : i32
    %c0_i32_0 = arith.constant 0 : i32
    return %arg0, %arg1, %c0_i32 : i32, i32, i32
  }
}

</mosaic_0001>

<bundles_post_ra>
// kernel: tpu_custom_call.1
= control target key start
LH: loop header
LB: loop body
LE: loop exit
PB: predicated region body
PF: predicated region fallthrough
CT: control target
= control target key end

     0   :  { %7 = vsyncpa [#allocation3], 0  ;;  %s345_s0 = inlined_call_operand.hbm [shape: f32[8,16,256], index: 0, kind: input, shape index: {}]   ;;  %s346_s1 = inlined_call_operand.hbm [shape: f32[1,256], index: 1, kind: input, shape index: {}]   ;;  %s347_s2 = inlined_call_operand.hbm [shape: f32[8,16,256], index: 2, kind: output, shape index: {}]  }
   0x1   :  { %8 = vsyncpa [#allocation6], 0 }
   0x2   :  { %9 = vsyncpa [#allocation4], 0  ;;  %s269_s9 = smov [#allocation2]  }
   0x3   :  { %s15_s10 = sshll.u32 %s269_s9, 4  ;;  %s16_s10 = int_to_ptr.vmem [resolvable:$true] %s15_s10 }
   0x4   :  { %s211_s11 = scalar_lea.vmem %s16_s10, 4096  ;;  %p216_p1 = scmp.lt.s32.totalorder %s16_s10, %s16_s10 }
   0x5   :  { %p212_p0 = scmp.ne.s32.totalorder %s16_s10, %s211_s11  ;;  %p217_p2 = scmp.lt.s32.totalorder %s211_s11, %s211_s11 }
   0x7   :  { %p218_p3 = por %p217_p2, %p216_p1 }
   0x9   :  { %p219_p4 = pnand %p218_p3, %p212_p0 }
   0xb   :  { %222 = shalt.err (!%p219_p4)
}
   0xc   :  { %s270_s12 = smov 256   ;;  %s271_s13 = smov 16  }
   0xd   :  { %21 = dma.hbm_to_vmem [thread:$0]  %s345_s0, 4096, %s16_s10, [#allocation3], %s270_s12, %s270_s12, %s271_s13  }
   0xe   :  { %s272_s16 = smov [#allocation5]  }
   0xf   :  { %s28_s17 = sshll.u32 %s272_s16, 4  ;;  %s29_s17 = int_to_ptr.vmem [resolvable:$true] %s28_s17 }
  0x10   :  { %s231_s18 = scalar_lea.vmem %s29_s17, 32  ;;  %p236_p6 = scmp.lt.s32.totalorder %s29_s17, %s29_s17 }
  0x11   :  { %p232_p5 = scmp.ne.s32.totalorder %s29_s17, %s231_s18  ;;  %p237_p7 = scmp.lt.s32.totalorder %s231_s18, %s231_s18 }
  0x13   :  { %p238_p8 = por %p237_p7, %p236_p6 }
  0x15   :  { %p239_p9 = pnand %p238_p8, %p232_p5 }
  0x17   :  { %242 = shalt.err (!%p239_p9)
}
  0x18   :  { %31 = dma.hbm_to_vmem [thread:$0]  %s346_s1, 32, %s29_s17, [#allocation6]  }
  0x19   :  { %263 = dma.done.wait [#allocation3], 4096  }
  0x1a   :  { %264 = vsyncadd [#allocation3], 4294963200 }
  0x1b   :  { %265 = dma.done.wait [#allocation6], 32  }
  0x1c   :  { %266 = vsyncadd [#allocation6], 4294967264  ;;  %v39_v0 = vlaneseq  ;;  %v51_v8 = vld [vmem:[#allocation5] sm:$0x3]  ;;  %v80_v16 = vld [vmem:[#allocation2 + $0x8] sm:$0xff]  ;;  %v273_v29 = vmov 0.0  }
  0x1d   :  { %v79_v14 = vld [vmem:[#allocation2] sm:$0xff]  ;;  %v81_v19 = vld [vmem:[#allocation2 + $0x10] sm:$0xff]  ;;  %v82_v20 = vld [vmem:[#allocation2 + $0x18] sm:$0xff]  ;;  %s274_s0 = smov [#allocation7]  }
  0x1e   :  { %v40_v1 = vshrl.u32 %v39_v0, 7  ;;  %v83_v18 = vld [vmem:[#allocation2 + $0x20] sm:$0xff]  ;;  %v84_v21 = vld [vmem:[#allocation2 + $0x28] sm:$0xff]  ;;  %v85_v22 = vld [vmem:[#allocation2 + $0x30] sm:$0xff]  ;;  %s180_s1 = sshll.u32 %s274_s0, 4  ;;  %s181_s1 = int_to_ptr.vmem [resolvable:$true] %s180_s1 }
  0x1f   :  { %v86_v23 = vld [vmem:[#allocation2 + $0x38] sm:$0xff]  ;;  %v87_v26 = vld [vmem:[#allocation2 + $0x40] sm:$0xff]  ;;  %v88_v27 = vld [vmem:[#allocation2 + $0x48] sm:$0xff]  ;;  %s243_s21 = scalar_lea.vmem %s181_s1, 4096  ;;  %p248_p11 = scmp.lt.s32.totalorder %s181_s1, %s181_s1 }
  0x20   :  { %v45_v2 = vcvt.s32.f32 %v40_v1  ;;  %v55_v3 = vsub.s32 0, %v40_v1  ;;  %v59_v4 = vsub.s32 1, %v40_v1  ;;  %v41_v5 = vadd.s32 8, %v40_v1  ;;  %v89_v28 = vld [vmem:[#allocation2 + $0x50] sm:$0xff]  ;;  %v90_v32 = vld [vmem:[#allocation2 + $0x58] sm:$0xff]  ;;  %v91_v33 = vld [vmem:[#allocation2 + $0x60] sm:$0xff]  ;;  %p244_p10 = scmp.ne.s32.totalorder %s181_s1, %s243_s21  ;;  %p249_p12 = scmp.lt.s32.totalorder %s243_s21, %s243_s21 }
  0x21   :  { %v92_v34 = vld [vmem:[#allocation2 + $0x68] sm:$0xff]  ;;  %v93_v37 = vld [vmem:[#allocation2 + $0x70] sm:$0xff]  ;;  %v94_v38 = vld [vmem:[#allocation2 + $0x78] sm:$0xff] }
  0x22   :  { %v47_v6 = vsub.f32 7.5, %v45_v2  ;;  %v46_v7 = vcvt.s32.f32 %v41_v5  ;;  %v56_v10 = vrot.slane %v51_v8, %v55_v3  ;;  %v60_v11 = vrot.slane %v51_v8, %v59_v4  ;;  %v95_v39 = vld [vmem:[#allocation2 + $0x80] sm:$0xff]  ;;  %v96_v44 = vld [vmem:[#allocation2 + $0x88] sm:$0xff]  ;;  %v97_v45 = vld [vmem:[#allocation2 + $0x90] sm:$0xff]  ;;  %p250_p13 = por %p249_p12, %p248_p11 }
  0x23   :  { %v98_v46 = vld [vmem:[#allocation2 + $0x98] sm:$0xff]  ;;  %v99_v51 = vld [vmem:[#allocation2 + $0xa0] sm:$0xff]  ;;  %v100_v52 = vld [vmem:[#allocation2 + $0xa8] sm:$0xff] }
  0x24   :  { %v49_v9 = vmul.f32 %v47_v6, %v47_v6  ;;  %v48_v12 = vsub.f32 7.5, %v46_v7  ;;  %v101_v53 = vld [vmem:[#allocation2 + $0xb0] sm:$0xff]  ;;  %v102_v58 = vld [vmem:[#allocation2 + $0xb8] sm:$0xff]  ;;  %v103_v59 = vld [vmem:[#allocation2 + $0xc0] sm:$0xff]  ;;  %p251_p0 = pnand %p250_p13, %p244_p10 }
  0x25   :  { %v104_v60 = vld [vmem:[#allocation2 + $0xc8] sm:$0xff]  ;;  %v105_v1 = vld [vmem:[#allocation2 + $0xd0] sm:$0xff]  ;;  %v106_v2 = vld [vmem:[#allocation2 + $0xd8] sm:$0xff] }
  0x26   :  { %v63_v13 = vadd.f32 %v56_v10, %v49_v9  ;;  %v64_v15 = vadd.f32 %v60_v11, %v49_v9  ;;  %v50_v17 = vmul.f32 %v48_v12, %v48_v12  ;;  %v107_v3 = vld [vmem:[#allocation2 + $0xe0] sm:$0xff]  ;;  %v108_v8 = vld [vmem:[#allocation2 + $0xe8] sm:$0xff]  ;;  %v109_v9 = vld [vmem:[#allocation2 + $0xf0] sm:$0xff] }
  0x28   :  { %vm67_vm0 = vcmp.le.f32.partialorder %v63_v13, 45.5625  ;;  %vm68_vm1 = vcmp.le.f32.partialorder %v64_v15, 45.5625  ;;  %v65_v24 = vadd.f32 %v56_v10, %v50_v17  ;;  %v66_v25 = vadd.f32 %v60_v11, %v50_v17  ;;  %v110_v10 = vld [vmem:[#allocation2 + $0xf8] sm:$0xff] }
  0x29   :  { %v299_v30 = vsel %vm67_vm0, 1.0, %v273_v29  ;;  %v301_v31 = vsel %vm68_vm1, 1.0, %v273_v29 }
  0x2a   :  { %v111_v35 = vmul.f32 %v299_v30, %v79_v14  ;;  %v112_v36 = vmul.f32 %v301_v31, %v80_v16  ;;  %vm69_vm2 = vcmp.le.f32.partialorder %v65_v24, 45.5625  ;;  %vm70_vm3 = vcmp.le.f32.partialorder %v66_v25, 45.5625 }
  0x2b   :  { %v305_v40 = vsel %vm69_vm2, 1.0, %v273_v29  ;;  %v307_v41 = vsel %vm70_vm3, 1.0, %v273_v29  ;;  %v115_v42 = vmul.f32 %v299_v30, %v83_v18  ;;  %v116_v43 = vmul.f32 %v301_v31, %v84_v21 }
  0x2c   :  { %143 = vst [vmem:[#allocation7] sm:$0xff] %v111_v35  ;;  %144 = vst [vmem:[#allocation7 + $0x8] sm:$0xff] %v112_v36  ;;  %v113_v47 = vmul.f32 %v305_v40, %v81_v19  ;;  %v114_v48 = vmul.f32 %v307_v41, %v82_v20  ;;  %v117_v49 = vmul.f32 %v305_v40, %v85_v22 }
  0x2d   :  { %v118_v50 = vmul.f32 %v307_v41, %v86_v23  ;;  %147 = vst [vmem:[#allocation7 + $0x20] sm:$0xff] %v115_v42  ;;  %148 = vst [vmem:[#allocation7 + $0x28] sm:$0xff] %v116_v43  ;;  %v119_v54 = vmul.f32 %v299_v30, %v87_v26  ;;  %v120_v55 = vmul.f32 %v301_v31, %v88_v27 }
  0x2e   :  { %v121_v56 = vmul.f32 %v305_v40, %v89_v28  ;;  %v122_v57 = vmul.f32 %v307_v41, %v90_v32  ;;  %145 = vst [vmem:[#allocation7 + $0x10] sm:$0xff] %v113_v47  ;;  %146 = vst [vmem:[#allocation7 + $0x18] sm:$0xff] %v114_v48  ;;  %v123_v61 = vmul.f32 %v299_v30, %v91_v33 }
  0x2f   :  { %149 = vst [vmem:[#allocation7 + $0x30] sm:$0xff] %v117_v49  ;;  %150 = vst [vmem:[#allocation7 + $0x38] sm:$0xff] %v118_v50  ;;  %v124_v62 = vmul.f32 %v301_v31, %v92_v34  ;;  %v125_v63 = vmul.f32 %v305_v40, %v93_v37  ;;  %v126_v0 = vmul.f32 %v307_v41, %v94_v38 }
  0x30   :  { %151 = vst [vmem:[#allocation7 + $0x40] sm:$0xff] %v119_v54  ;;  %152 = vst [vmem:[#allocation7 + $0x48] sm:$0xff] %v120_v55  ;;  %v127_v4 = vmul.f32 %v299_v30, %v95_v39  ;;  %v128_v5 = vmul.f32 %v301_v31, %v96_v44  ;;  %v129_v6 = vmul.f32 %v305_v40, %v97_v45 }
  0x31   :  { %153 = vst [vmem:[#allocation7 + $0x50] sm:$0xff] %v121_v56  ;;  %154 = vst [vmem:[#allocation7 + $0x58] sm:$0xff] %v122_v57  ;;  %v130_v7 = vmul.f32 %v307_v41, %v98_v46  ;;  %v131_v11 = vmul.f32 %v299_v30, %v99_v51  ;;  %v132_v12 = vmul.f32 %v301_v31, %v100_v52 }
  0x32   :  { %155 = vst [vmem:[#allocation7 + $0x60] sm:$0xff] %v123_v61  ;;  %156 = vst [vmem:[#allocation7 + $0x68] sm:$0xff] %v124_v62  ;;  %v133_v13 = vmul.f32 %v305_v40, %v101_v53  ;;  %v134_v14 = vmul.f32 %v307_v41, %v102_v58  ;;  %v135_v15 = vmul.f32 %v299_v30, %v103_v59 }
  0x33   :  { %157 = vst [vmem:[#allocation7 + $0x70] sm:$0xff] %v125_v63  ;;  %158 = vst [vmem:[#allocation7 + $0x78] sm:$0xff] %v126_v0  ;;  %v136_v16 = vmul.f32 %v301_v31, %v104_v60  ;;  %v137_v17 = vmul.f32 %v305_v40, %v105_v1  ;;  %v138_v18 = vmul.f32 %v307_v41, %v106_v2 }
  0x34   :  { %159 = vst [vmem:[#allocation7 + $0x80] sm:$0xff] %v127_v4  ;;  %160 = vst [vmem:[#allocation7 + $0x88] sm:$0xff] %v128_v5  ;;  %v139_v19 = vmul.f32 %v299_v30, %v107_v3  ;;  %v140_v20 = vmul.f32 %v301_v31, %v108_v8  ;;  %v141_v21 = vmul.f32 %v305_v40, %v109_v9 }
  0x35   :  { %161 = vst [vmem:[#allocation7 + $0x90] sm:$0xff] %v129_v6  ;;  %162 = vst [vmem:[#allocation7 + $0x98] sm:$0xff] %v130_v7  ;;  %v142_v22 = vmul.f32 %v307_v41, %v110_v10 }
  0x36   :  { %163 = vst [vmem:[#allocation7 + $0xa0] sm:$0xff] %v131_v11  ;;  %164 = vst [vmem:[#allocation7 + $0xa8] sm:$0xff] %v132_v12 }
  0x37   :  { %165 = vst [vmem:[#allocation7 + $0xb0] sm:$0xff] %v133_v13  ;;  %166 = vst [vmem:[#allocation7 + $0xb8] sm:$0xff] %v134_v14 }
  0x38   :  { %167 = vst [vmem:[#allocation7 + $0xc0] sm:$0xff] %v135_v15  ;;  %168 = vst [vmem:[#allocation7 + $0xc8] sm:$0xff] %v136_v16 }
  0x39   :  { %169 = vst [vmem:[#allocation7 + $0xd0] sm:$0xff] %v137_v17  ;;  %170 = vst [vmem:[#allocation7 + $0xd8] sm:$0xff] %v138_v18 }
  0x3a   :  { %171 = vst [vmem:[#allocation7 + $0xe0] sm:$0xff] %v139_v19  ;;  %172 = vst [vmem:[#allocation7 + $0xe8] sm:$0xff] %v140_v20 }
  0x3b   :  { %173 = vst [vmem:[#allocation7 + $0xf0] sm:$0xff] %v141_v21  ;;  %174 = vst [vmem:[#allocation7 + $0xf8] sm:$0xff] %v142_v22 }
  0x3c   :  { %254 = shalt.err (!%p251_p0)
}
  0x3d   :  { %186 = dma.vmem_to_hbm [thread:$0]  %s181_s1, 4096, %s347_s2, [#allocation4], %s270_s12, %s270_s12, %s271_s13  }
  0x3e   :  { %267 = dma.done.wait [#allocation4], 4096  }
  0x3f   :  { %268 = vsyncadd [#allocation4], 4294963200 }
  0x40   :  { %190 = vsyncpa [#allocation3], 1 }
  0x41   :  { %191 = vsyncpa [#allocation6], 1 }
  0x42   :  { %192 = vsyncpa [#allocation4], 1 }

</bundles_post_ra>
